<compile_context>
chip_gen: v7x
topology: tpu7x:2x2x1
jax: 0.10.0
libtpu: 0.0.40
codegen_flags: <defaults>
</compile_context>

<pallas_src>
import functools

import jax
import jax.numpy as jnp
from jax.experimental import pallas as pl
from jax.experimental.pallas import tpu as pltpu


# ----------------------------------------------------------------------------
# Pallas kernel: fused DoubleConv (conv+bias+ReLU, conv3x3+bias+ReLU) per image
# ----------------------------------------------------------------------------
def _double_conv_kernel(xp_ref, w1_ref, b1_ref, w2_ref, b2_ref, out_ref,
                        y_pad, *, K1H, K1W, stride, OH, OW):
    """xp_ref : (stride*stride, Hq, Wq, Cin)  phase-decomposed padded image
       w1_ref : (K1H, K1W, Cin, Cmid)   b1_ref: (1, Cmid)
       w2_ref : (3, 3, Cmid, Cout)      b2_ref: (1, Cout)
       out_ref: (1, OH*OW, Cout)
       y_pad  : VMEM scratch (OH+2, OW+2, Cmid) -- zero-padded intermediate
    """
    Cin = xp_ref.shape[-1]
    Cmid = w1_ref.shape[-1]
    Cout = out_ref.shape[-1]

    # ---- conv1 (kernel K1, stride s, pad p already applied) + bias + ReLU ----
    acc1 = jnp.zeros((OH * OW, Cmid), jnp.float32)
    for kh in range(K1H):
        qh, ph = kh // stride, kh % stride
        for kw in range(K1W):
            qw, pw = kw // stride, kw % stride
            # unit-stride static slice of the (ph, pw) phase plane
            patch = xp_ref[ph * stride + pw, qh:qh + OH, qw:qw + OW, :]
            patch = patch.reshape(OH * OW, Cin).astype(jnp.float32)
            wk = w1_ref[kh, kw].astype(jnp.float32)             # (Cin, Cmid)
            acc1 = acc1 + jnp.dot(patch, wk,
                                  preferred_element_type=jnp.float32)
    y1 = jnp.maximum(acc1 + b1_ref[...].astype(jnp.float32), 0.0)

    # Keep the intermediate on-chip: write it into the interior of a
    # zero-initialized VMEM scratch => zero-padding for the 3x3 conv for free.
    y_pad[...] = jnp.zeros_like(y_pad)
    y_pad[1:OH + 1, 1:OW + 1, :] = y1.reshape(OH, OW, Cmid)

    # ---- conv2 (3x3, stride 1, pad 1) + bias + ReLU ----
    acc2 = jnp.zeros((OH * OW, Cout), jnp.float32)
    for kh in range(3):
        for kw in range(3):
            patch = y_pad[kh:kh + OH, kw:kw + OW, :].reshape(OH * OW, Cmid)
            wk = w2_ref[kh, kw].astype(jnp.float32)             # (Cmid, Cout)
            acc2 = acc2 + jnp.dot(patch, wk,
                                  preferred_element_type=jnp.float32)
    acc2 = acc2 + b2_ref[...].astype(jnp.float32)
    out_ref[0] = jnp.maximum(acc2, 0.0).astype(out_ref.dtype)


# ----------------------------------------------------------------------------
# Wrapper: layout prep + pallas_call (one call per DoubleConv layer)
# ----------------------------------------------------------------------------
def _phase_decompose(x_nhwc, padding, s, Hq, Wq):
    """Zero-pad spatially and split into s*s stride-phases.

    Returns (B * s * s, Hq, Wq, C) with phase index = ph * s + pw, where
    phase[ph, pw][j, i] = x_padded[j * s + ph, i * s + pw].
    Total bytes == padded input bytes (no duplication).
    """
    B, H, W, C = x_nhwc.shape
    Hp, Wp = Hq * s, Wq * s
    pad_b = max(Hp - H - padding, 0)
    pad_r = max(Wp - W - padding, 0)
    xpad = jnp.pad(x_nhwc, ((0, 0), (padding, pad_b), (padding, pad_r), (0, 0)))
    xpad = xpad[:, :Hp, :Wp, :]                     # crop is safe: unused rows
    xph = xpad.reshape(B, Hq, s, Wq, s, C)
    xph = jnp.transpose(xph, (0, 2, 4, 1, 3, 5))    # (B, s, s, Hq, Wq, C)
    return xph.reshape(B * s * s, Hq, Wq, C)


def double_conv_pallas(x, w1, b1, w2, b2, *, stride, padding):
    """Fused DoubleConv. x: (B,H,W,Cin) NHWC; w1: (K,K,Cin,Cmid); w2: (3,3,Cmid,Cout)."""
    B, H, W, Cin = x.shape
    K1H, K1W, _, Cmid = w1.shape
    _, _, _, Cout = w2.shape
    s = int(stride)
    OH = (H + 2 * padding - K1H) // s + 1
    OW = (W + 2 * padding - K1W) // s + 1
    Hq = OH + (K1H - 1) // s
    Wq = OW + (K1W - 1) // s
    S2 = s * s

    xp = _phase_decompose(x, padding, s, Hq, Wq)     # (B*S2, Hq, Wq, Cin)
    b1_2d = b1.reshape(1, Cmid)
    b2_2d = b2.reshape(1, Cout)

    kernel = functools.partial(_double_conv_kernel,
                               K1H=K1H, K1W=K1W, stride=s, OH=OH, OW=OW)

    out = pl.pallas_call(
        kernel,
        out_shape=jax.ShapeDtypeStruct((B, OH * OW, Cout), x.dtype),
        grid=(B,),
        in_specs=[
            pl.BlockSpec((S2, Hq, Wq, Cin), lambda i: (i, 0, 0, 0)),
            pl.BlockSpec((K1H, K1W, Cin, Cmid), lambda i: (0, 0, 0, 0)),
            pl.BlockSpec((1, Cmid), lambda i: (0, 0)),
            pl.BlockSpec((3, 3, Cmid, Cout), lambda i: (0, 0, 0, 0)),
            pl.BlockSpec((1, Cout), lambda i: (0, 0)),
        ],
        out_specs=pl.BlockSpec((1, OH * OW, Cout), lambda i: (i, 0, 0)),
        scratch_shapes=[pltpu.VMEM((OH + 2, OW + 2, Cmid), jnp.float32)],
        compiler_params=pltpu.CompilerParams(
            dimension_semantics=("parallel",)),
    )(xp, w1, b1_2d, w2, b2_2d)
    return out.reshape(B, OH, OW, Cout)


# ----------------------------------------------------------------------------
# DownsampleConv forward (NCHW in / NCHW out, like the PyTorch module)
# ----------------------------------------------------------------------------
def downsample_conv_forward(x_nchw, params_list, config):
    x = jnp.transpose(x_nchw, (0, 2, 3, 1))          # NCHW -> NHWC, once
    for p, stride, padding in zip(params_list, config['stride'],
                                  config['padding']):
        x = double_conv_pallas(x, p['w1'], p['b1'], p['w2'], p['b2'],
                               stride=stride, padding=padding)
    return jnp.transpose(x, (0, 3, 1, 2))            # NHWC -> NCHW, once


# ----------------------------------------------------------------------------
# Pure-JAX reference (lax.conv) for self-check
# ----------------------------------------------------------------------------
def _conv2d_relu_ref(x, w, b, *, stride, padding):
    y = jax.lax.conv_general_dilated(
        x, w, window_strides=(stride, stride),
        padding=((padding, padding), (padding, padding)),
        dimension_numbers=('NHWC', 'HWIO', 'NHWC'))
    return jnp.maximum(y + b[None, None, None, :], 0.0)


def downsample_conv_reference(x_nchw, params_list, config):
    x = jnp.transpose(x_nchw, (0, 2, 3, 1))
    for p, stride, padding in zip(params_list, config['stride'],
                                  config['padding']):
        x = _conv2d_relu_ref(x, p['w1'], p['b1'],
                             stride=stride, padding=padding)
        x = _conv2d_relu_ref(x, p['w2'], p['b2'], stride=1, padding=1)
    return jnp.transpose(x, (0, 3, 1, 2))


# ----------------------------------------------------------------------------
# Param init (deterministic, kaiming-ish scale)
# ----------------------------------------------------------------------------
def init_double_conv_params(key, in_ch, out_ch, ksize):
    k1, k2, k3, k4 = jax.random.split(key, 4)
    w1 = jax.random.normal(k1, (ksize, ksize, in_ch, out_ch), jnp.float32)
    w1 = w1 * (2.0 / (ksize * ksize * in_ch)) ** 0.5
    b1 = 0.01 * jax.random.normal(k2, (out_ch,), jnp.float32)
    w2 = jax.random.normal(k3, (3, 3, out_ch, out_ch), jnp.float32)
    w2 = w2 * (2.0 / (9 * out_ch)) ** 0.5
    b2 = 0.01 * jax.random.normal(k4, (out_ch,), jnp.float32)
    return dict(w1=w1, b1=b1, w2=w2, b2=b2)


if __name__ == "__main__":
    key = jax.random.PRNGKey(0)
    config = {
        'input_dim': 16,
        'kernal_size': [3, 3],
        'dim': [32, 64],
        'stride': [2, 1],
        'padding': [1, 1],
    }

    kx, kp = jax.random.split(key)
    B, C, H, W = 2, config['input_dim'], 16, 16
    x = jax.random.normal(kx, (B, C, H, W), jnp.float32)

    params = []
    in_ch = config['input_dim']
    layer_keys = jax.random.split(kp, len(config['dim']))
    for lk, ks, dim in zip(layer_keys, config['kernal_size'], config['dim']):
        params.append(init_double_conv_params(lk, in_ch, dim, ks))
        in_ch = dim

    out = downsample_conv_forward(x, params, config)
    out = jax.block_until_ready(out)

    ref = downsample_conv_reference(x, params, config)
    assert out.shape == ref.shape, (out.shape, ref.shape)
    max_err = float(jnp.max(jnp.abs(out - ref)))
    assert jnp.allclose(out, ref, rtol=5e-2, atol=5e-2), max_err

    print("KERNEL_OK")
</pallas_src>

<mosaic_0001>
module attributes {stable_mosaic.version = 11 : i64} {
  func.func @_double_conv_kernel(%arg0: i32, %arg1: memref<4x9x9x16xf32, #tpu.memory_space<vmem>>, %arg2: memref<3x3x16x32xf32, #tpu.memory_space<vmem>>, %arg3: memref<1x32xf32, #tpu.memory_space<vmem>>, %arg4: memref<3x3x32x32xf32, #tpu.memory_space<vmem>>, %arg5: memref<1x32xf32, #tpu.memory_space<vmem>>, %arg6: memref<1x64x32xf32, #tpu.memory_space<vmem>>, %arg7: memref<10x10x32xf32, #tpu.memory_space<vmem>>) attributes {dimension_semantics = [#tpu.dimension_semantics<parallel>], iteration_bounds = array<i64: 2>, scalar_prefetch = 0 : i64, scratch_operands = 1 : i64, tpu.core_type = #tpu.core_type<tc>, window_params = [{transform_indices = @transform_0, window_bounds = array<i64: 4, 9, 9, 16>}, {pipeline_mode = #tpu.pipeline_mode<synchronous>, transform_indices = @transform_1, window_bounds = array<i64: 3, 3, 16, 32>}, {pipeline_mode = #tpu.pipeline_mode<synchronous>, transform_indices = @transform_2, window_bounds = array<i64: 1, 32>}, {pipeline_mode = #tpu.pipeline_mode<synchronous>, transform_indices = @transform_3, window_bounds = array<i64: 3, 3, 32, 32>}, {pipeline_mode = #tpu.pipeline_mode<synchronous>, transform_indices = @transform_4, window_bounds = array<i64: 1, 32>}, {transform_indices = @transform_5, window_bounds = array<i64: 1, 64, 32>}]} {
    %cst = arith.constant 0.000000e+00 : f32
    %0 = vector.broadcast %cst : f32 to vector<64x32xf32>
    %c0 = arith.constant 0 : index
    %c0_0 = arith.constant 0 : index
    %c0_1 = arith.constant 0 : index
    %c0_2 = arith.constant 0 : index
    %1 = vector.load %arg1[%c0, %c0_0, %c0_1, %c0_2] : memref<4x9x9x16xf32, #tpu.memory_space<vmem>>, vector<1x8x8x16xf32>
    %2 = vector.shape_cast %1 : vector<1x8x8x16xf32> to vector<8x8x16xf32>
    %3 = vector.shape_cast %2 : vector<8x8x16xf32> to vector<64x16xf32>
    %c0_3 = arith.constant 0 : index
    %c0_4 = arith.constant 0 : index
    %c0_5 = arith.constant 0 : index
    %c0_6 = arith.constant 0 : index
    %4 = vector.load %arg2[%c0_3, %c0_4, %c0_5, %c0_6] : memref<3x3x16x32xf32, #tpu.memory_space<vmem>>, vector<1x1x16x32xf32>
    %5 = vector.shape_cast %4 : vector<1x1x16x32xf32> to vector<16x32xf32>
    %cst_7 = arith.constant dense<0.000000e+00> : vector<64x32xf32>
    %6 = tpu.matmul %3, %5, %cst_7 {dimension_numbers = #tpu.dot_dimension_numbers<[1], [0], [0], [1], [0, 0, 1, 1], [], []>} : vector<64x16xf32>, vector<16x32xf32>, vector<64x32xf32> -> vector<64x32xf32>
    %7 = arith.addf %0, %6 : vector<64x32xf32>
    %c1 = arith.constant 1 : index
    %c0_8 = arith.constant 0 : index
    %c0_9 = arith.constant 0 : index
    %c0_10 = arith.constant 0 : index
    %8 = vector.load %arg1[%c1, %c0_8, %c0_9, %c0_10] : memref<4x9x9x16xf32, #tpu.memory_space<vmem>>, vector<1x8x8x16xf32>
    %9 = vector.shape_cast %8 : vector<1x8x8x16xf32> to vector<8x8x16xf32>
    %10 = vector.shape_cast %9 : vector<8x8x16xf32> to vector<64x16xf32>
    %c0_11 = arith.constant 0 : index
    %c1_12 = arith.constant 1 : index
    %c0_13 = arith.constant 0 : index
    %c0_14 = arith.constant 0 : index
    %11 = vector.load %arg2[%c0_11, %c1_12, %c0_13, %c0_14] : memref<3x3x16x32xf32, #tpu.memory_space<vmem>>, vector<1x1x16x32xf32>
    %12 = vector.shape_cast %11 : vector<1x1x16x32xf32> to vector<16x32xf32>
    %cst_15 = arith.constant dense<0.000000e+00> : vector<64x32xf32>
    %13 = tpu.matmul %10, %12, %cst_15 {dimension_numbers = #tpu.dot_dimension_numbers<[1], [0], [0], [1], [0, 0, 1, 1], [], []>} : vector<64x16xf32>, vector<16x32xf32>, vector<64x32xf32> -> vector<64x32xf32>
    %14 = arith.addf %7, %13 : vector<64x32xf32>
    %c0_16 = arith.constant 0 : index
    %c0_17 = arith.constant 0 : index
    %c1_18 = arith.constant 1 : index
    %c0_19 = arith.constant 0 : index
    %15 = vector.load %arg1[%c0_16, %c0_17, %c1_18, %c0_19] : memref<4x9x9x16xf32, #tpu.memory_space<vmem>>, vector<1x8x8x16xf32>
    %16 = vector.shape_cast %15 : vector<1x8x8x16xf32> to vector<8x8x16xf32>
    %17 = vector.shape_cast %16 : vector<8x8x16xf32> to vector<64x16xf32>
    %c0_20 = arith.constant 0 : index
    %c2 = arith.constant 2 : index
    %c0_21 = arith.constant 0 : index
    %c0_22 = arith.constant 0 : index
    %18 = vector.load %arg2[%c0_20, %c2, %c0_21, %c0_22] : memref<3x3x16x32xf32, #tpu.memory_space<vmem>>, vector<1x1x16x32xf32>
    %19 = vector.shape_cast %18 : vector<1x1x16x32xf32> to vector<16x32xf32>
    %cst_23 = arith.constant dense<0.000000e+00> : vector<64x32xf32>
    %20 = tpu.matmul %17, %19, %cst_23 {dimension_numbers = #tpu.dot_dimension_numbers<[1], [0], [0], [1], [0, 0, 1, 1], [], []>} : vector<64x16xf32>, vector<16x32xf32>, vector<64x32xf32> -> vector<64x32xf32>
    %21 = arith.addf %14, %20 : vector<64x32xf32>
    %c2_24 = arith.constant 2 : index
    %c0_25 = arith.constant 0 : index
    %c0_26 = arith.constant 0 : index
    %c0_27 = arith.constant 0 : index
    %22 = vector.load %arg1[%c2_24, %c0_25, %c0_26, %c0_27] : memref<4x9x9x16xf32, #tpu.memory_space<vmem>>, vector<1x8x8x16xf32>
    %23 = vector.shape_cast %22 : vector<1x8x8x16xf32> to vector<8x8x16xf32>
    %24 = vector.shape_cast %23 : vector<8x8x16xf32> to vector<64x16xf32>
    %c1_28 = arith.constant 1 : index
    %c0_29 = arith.constant 0 : index
    %c0_30 = arith.constant 0 : index
    %c0_31 = arith.constant 0 : index
    %25 = vector.load %arg2[%c1_28, %c0_29, %c0_30, %c0_31] : memref<3x3x16x32xf32, #tpu.memory_space<vmem>>, vector<1x1x16x32xf32>
    %26 = vector.shape_cast %25 : vector<1x1x16x32xf32> to vector<16x32xf32>
    %cst_32 = arith.constant dense<0.000000e+00> : vector<64x32xf32>
    %27 = tpu.matmul %24, %26, %cst_32 {dimension_numbers = #tpu.dot_dimension_numbers<[1], [0], [0], [1], [0, 0, 1, 1], [], []>} : vector<64x16xf32>, vector<16x32xf32>, vector<64x32xf32> -> vector<64x32xf32>
    %28 = arith.addf %21, %27 : vector<64x32xf32>
    %c3 = arith.constant 3 : index
    %c0_33 = arith.constant 0 : index
    %c0_34 = arith.constant 0 : index
    %c0_35 = arith.constant 0 : index
    %29 = vector.load %arg1[%c3, %c0_33, %c0_34, %c0_35] : memref<4x9x9x16xf32, #tpu.memory_space<vmem>>, vector<1x8x8x16xf32>
    %30 = vector.shape_cast %29 : vector<1x8x8x16xf32> to vector<8x8x16xf32>
    %31 = vector.shape_cast %30 : vector<8x8x16xf32> to vector<64x16xf32>
    %c1_36 = arith.constant 1 : index
    %c1_37 = arith.constant 1 : index
    %c0_38 = arith.constant 0 : index
    %c0_39 = arith.constant 0 : index
    %32 = vector.load %arg2[%c1_36, %c1_37, %c0_38, %c0_39] : memref<3x3x16x32xf32, #tpu.memory_space<vmem>>, vector<1x1x16x32xf32>
    %33 = vector.shape_cast %32 : vector<1x1x16x32xf32> to vector<16x32xf32>
    %cst_40 = arith.constant dense<0.000000e+00> : vector<64x32xf32>
    %34 = tpu.matmul %31, %33, %cst_40 {dimension_numbers = #tpu.dot_dimension_numbers<[1], [0], [0], [1], [0, 0, 1, 1], [], []>} : vector<64x16xf32>, vector<16x32xf32>, vector<64x32xf32> -> vector<64x32xf32>
    %35 = arith.addf %28, %34 : vector<64x32xf32>
    %c2_41 = arith.constant 2 : index
    %c0_42 = arith.constant 0 : index
    %c1_43 = arith.constant 1 : index
    %c0_44 = arith.constant 0 : index
    %36 = vector.load %arg1[%c2_41, %c0_42, %c1_43, %c0_44] : memref<4x9x9x16xf32, #tpu.memory_space<vmem>>, vector<1x8x8x16xf32>
    %37 = vector.shape_cast %36 : vector<1x8x8x16xf32> to vector<8x8x16xf32>
    %38 = vector.shape_cast %37 : vector<8x8x16xf32> to vector<64x16xf32>
    %c1_45 = arith.constant 1 : index
    %c2_46 = arith.constant 2 : index
    %c0_47 = arith.constant 0 : index
    %c0_48 = arith.constant 0 : index
    %39 = vector.load %arg2[%c1_45, %c2_46, %c0_47, %c0_48] : memref<3x3x16x32xf32, #tpu.memory_space<vmem>>, vector<1x1x16x32xf32>
    %40 = vector.shape_cast %39 : vector<1x1x16x32xf32> to vector<16x32xf32>
    %cst_49 = arith.constant dense<0.000000e+00> : vector<64x32xf32>
    %41 = tpu.matmul %38, %40, %cst_49 {dimension_numbers = #tpu.dot_dimension_numbers<[1], [0], [0], [1], [0, 0, 1, 1], [], []>} : vector<64x16xf32>, vector<16x32xf32>, vector<64x32xf32> -> vector<64x32xf32>
    %42 = arith.addf %35, %41 : vector<64x32xf32>
    %c0_50 = arith.constant 0 : index
    %c1_51 = arith.constant 1 : index
    %c0_52 = arith.constant 0 : index
    %c0_53 = arith.constant 0 : index
    %43 = vector.load %arg1[%c0_50, %c1_51, %c0_52, %c0_53] : memref<4x9x9x16xf32, #tpu.memory_space<vmem>>, vector<1x8x8x16xf32>
    %44 = vector.shape_cast %43 : vector<1x8x8x16xf32> to vector<8x8x16xf32>
    %45 = vector.shape_cast %44 : vector<8x8x16xf32> to vector<64x16xf32>
    %c2_54 = arith.constant 2 : index
    %c0_55 = arith.constant 0 : index
    %c0_56 = arith.constant 0 : index
    %c0_57 = arith.constant 0 : index
    %46 = vector.load %arg2[%c2_54, %c0_55, %c0_56, %c0_57] : memref<3x3x16x32xf32, #tpu.memory_space<vmem>>, vector<1x1x16x32xf32>
    %47 = vector.shape_cast %46 : vector<1x1x16x32xf32> to vector<16x32xf32>
    %cst_58 = arith.constant dense<0.000000e+00> : vector<64x32xf32>
    %48 = tpu.matmul %45, %47, %cst_58 {dimension_numbers = #tpu.dot_dimension_numbers<[1], [0], [0], [1], [0, 0, 1, 1], [], []>} : vector<64x16xf32>, vector<16x32xf32>, vector<64x32xf32> -> vector<64x32xf32>
    %49 = arith.addf %42, %48 : vector<64x32xf32>
    %c1_59 = arith.constant 1 : index
    %c1_60 = arith.constant 1 : index
    %c0_61 = arith.constant 0 : index
    %c0_62 = arith.constant 0 : index
    %50 = vector.load %arg1[%c1_59, %c1_60, %c0_61, %c0_62] : memref<4x9x9x16xf32, #tpu.memory_space<vmem>>, vector<1x8x8x16xf32>
    %51 = vector.shape_cast %50 : vector<1x8x8x16xf32> to vector<8x8x16xf32>
    %52 = vector.shape_cast %51 : vector<8x8x16xf32> to vector<64x16xf32>
    %c2_63 = arith.constant 2 : index
    %c1_64 = arith.constant 1 : index
    %c0_65 = arith.constant 0 : index
    %c0_66 = arith.constant 0 : index
    %53 = vector.load %arg2[%c2_63, %c1_64, %c0_65, %c0_66] : memref<3x3x16x32xf32, #tpu.memory_space<vmem>>, vector<1x1x16x32xf32>
    %54 = vector.shape_cast %53 : vector<1x1x16x32xf32> to vector<16x32xf32>
    %cst_67 = arith.constant dense<0.000000e+00> : vector<64x32xf32>
    %55 = tpu.matmul %52, %54, %cst_67 {dimension_numbers = #tpu.dot_dimension_numbers<[1], [0], [0], [1], [0, 0, 1, 1], [], []>} : vector<64x16xf32>, vector<16x32xf32>, vector<64x32xf32> -> vector<64x32xf32>
    %56 = arith.addf %49, %55 : vector<64x32xf32>
    %c0_68 = arith.constant 0 : index
    %c1_69 = arith.constant 1 : index
    %c1_70 = arith.constant 1 : index
    %c0_71 = arith.constant 0 : index
    %57 = vector.load %arg1[%c0_68, %c1_69, %c1_70, %c0_71] : memref<4x9x9x16xf32, #tpu.memory_space<vmem>>, vector<1x8x8x16xf32>
    %58 = vector.shape_cast %57 : vector<1x8x8x16xf32> to vector<8x8x16xf32>
    %59 = vector.shape_cast %58 : vector<8x8x16xf32> to vector<64x16xf32>
    %c2_72 = arith.constant 2 : index
    %c2_73 = arith.constant 2 : index
    %c0_74 = arith.constant 0 : index
    %c0_75 = arith.constant 0 : index
    %60 = vector.load %arg2[%c2_72, %c2_73, %c0_74, %c0_75] : memref<3x3x16x32xf32, #tpu.memory_space<vmem>>, vector<1x1x16x32xf32>
    %61 = vector.shape_cast %60 : vector<1x1x16x32xf32> to vector<16x32xf32>
    %cst_76 = arith.constant dense<0.000000e+00> : vector<64x32xf32>
    %62 = tpu.matmul %59, %61, %cst_76 {dimension_numbers = #tpu.dot_dimension_numbers<[1], [0], [0], [1], [0, 0, 1, 1], [], []>} : vector<64x16xf32>, vector<16x32xf32>, vector<64x32xf32> -> vector<64x32xf32>
    %63 = arith.addf %56, %62 : vector<64x32xf32>
    %c0_77 = arith.constant 0 : index
    %c0_78 = arith.constant 0 : index
    %64 = vector.load %arg3[%c0_77, %c0_78] : memref<1x32xf32, #tpu.memory_space<vmem>>, vector<1x32xf32>
    %65 = vector.broadcast %64 : vector<1x32xf32> to vector<64x32xf32>
    %66 = arith.addf %63, %65 : vector<64x32xf32>
    %cst_79 = arith.constant 0.000000e+00 : f32
    %67 = vector.broadcast %cst_79 : f32 to vector<64x32xf32>
    %68 = arith.maximumf %66, %67 : vector<64x32xf32>
    %cst_80 = arith.constant 0.000000e+00 : f32
    %69 = vector.broadcast %cst_80 : f32 to vector<10x10x32xf32>
    %c0_81 = arith.constant 0 : index
    %c0_82 = arith.constant 0 : index
    %c0_83 = arith.constant 0 : index
    %70 = vector.load %arg7[%c0_81, %c0_82, %c0_83] : memref<10x10x32xf32, #tpu.memory_space<vmem>>, vector<10x10x32xf32>
    tpu.vector_store %arg7[%c0_81, %c0_82, %c0_83], %69 {strides = array<i32>} : memref<10x10x32xf32, #tpu.memory_space<vmem>>, vector<10x10x32xf32>,
    %71 = vector.shape_cast %68 : vector<64x32xf32> to vector<8x8x32xf32>
    %c1_84 = arith.constant 1 : index
    %c1_85 = arith.constant 1 : index
    %c0_86 = arith.constant 0 : index
    %72 = vector.load %arg7[%c1_84, %c1_85, %c0_86] : memref<10x10x32xf32, #tpu.memory_space<vmem>>, vector<8x8x32xf32>
    tpu.vector_store %arg7[%c1_84, %c1_85, %c0_86], %71 {strides = array<i32>} : memref<10x10x32xf32, #tpu.memory_space<vmem>>, vector<8x8x32xf32>,
    %cst_87 = arith.constant 0.000000e+00 : f32
    %73 = vector.broadcast %cst_87 : f32 to vector<64x32xf32>
    %c0_88 = arith.constant 0 : index
    %c0_89 = arith.constant 0 : index
    %c0_90 = arith.constant 0 : index
    %74 = vector.load %arg7[%c0_88, %c0_89, %c0_90] : memref<10x10x32xf32, #tpu.memory_space<vmem>>, vector<8x8x32xf32>
    %75 = vector.shape_cast %74 : vector<8x8x32xf32> to vector<64x32xf32>
    %c0_91 = arith.constant 0 : index
    %c0_92 = arith.constant 0 : index
    %c0_93 = arith.constant 0 : index
    %c0_94 = arith.constant 0 : index
    %76 = vector.load %arg4[%c0_91, %c0_92, %c0_93, %c0_94] : memref<3x3x32x32xf32, #tpu.memory_space<vmem>>, vector<1x1x32x32xf32>
    %77 = vector.shape_cast %76 : vector<1x1x32x32xf32> to vector<32x32xf32>
    %cst_95 = arith.constant dense<0.000000e+00> : vector<64x32xf32>
    %78 = tpu.matmul %75, %77, %cst_95 {dimension_numbers = #tpu.dot_dimension_numbers<[1], [0], [0], [1], [0, 0, 1, 1], [], []>} : vector<64x32xf32>, vector<32x32xf32>, vector<64x32xf32> -> vector<64x32xf32>
    %79 = arith.addf %73, %78 : vector<64x32xf32>
    %c0_96 = arith.constant 0 : index
    %c1_97 = arith.constant 1 : index
    %c0_98 = arith.constant 0 : index
    %80 = vector.load %arg7[%c0_96, %c1_97, %c0_98] : memref<10x10x32xf32, #tpu.memory_space<vmem>>, vector<8x8x32xf32>
    %81 = vector.shape_cast %80 : vector<8x8x32xf32> to vector<64x32xf32>
    %c0_99 = arith.constant 0 : index
    %c1_100 = arith.constant 1 : index
    %c0_101 = arith.constant 0 : index
    %c0_102 = arith.constant 0 : index
    %82 = vector.load %arg4[%c0_99, %c1_100, %c0_101, %c0_102] : memref<3x3x32x32xf32, #tpu.memory_space<vmem>>, vector<1x1x32x32xf32>
    %83 = vector.shape_cast %82 : vector<1x1x32x32xf32> to vector<32x32xf32>
    %cst_103 = arith.constant dense<0.000000e+00> : vector<64x32xf32>
    %84 = tpu.matmul %81, %83, %cst_103 {dimension_numbers = #tpu.dot_dimension_numbers<[1], [0], [0], [1], [0, 0, 1, 1], [], []>} : vector<64x32xf32>, vector<32x32xf32>, vector<64x32xf32> -> vector<64x32xf32>
    %85 = arith.addf %79, %84 : vector<64x32xf32>
    %c0_104 = arith.constant 0 : index
    %c2_105 = arith.constant 2 : index
    %c0_106 = arith.constant 0 : index
    %86 = vector.load %arg7[%c0_104, %c2_105, %c0_106] : memref<10x10x32xf32, #tpu.memory_space<vmem>>, vector<8x8x32xf32>
    %87 = vector.shape_cast %86 : vector<8x8x32xf32> to vector<64x32xf32>
    %c0_107 = arith.constant 0 : index
    %c2_108 = arith.constant 2 : index
    %c0_109 = arith.constant 0 : index
    %c0_110 = arith.constant 0 : index
    %88 = vector.load %arg4[%c0_107, %c2_108, %c0_109, %c0_110] : memref<3x3x32x32xf32, #tpu.memory_space<vmem>>, vector<1x1x32x32xf32>
    %89 = vector.shape_cast %88 : vector<1x1x32x32xf32> to vector<32x32xf32>
    %cst_111 = arith.constant dense<0.000000e+00> : vector<64x32xf32>
    %90 = tpu.matmul %87, %89, %cst_111 {dimension_numbers = #tpu.dot_dimension_numbers<[1], [0], [0], [1], [0, 0, 1, 1], [], []>} : vector<64x32xf32>, vector<32x32xf32>, vector<64x32xf32> -> vector<64x32xf32>
    %91 = arith.addf %85, %90 : vector<64x32xf32>
    %c1_112 = arith.constant 1 : index
    %c0_113 = arith.constant 0 : index
    %c0_114 = arith.constant 0 : index
    %92 = vector.load %arg7[%c1_112, %c0_113, %c0_114] : memref<10x10x32xf32, #tpu.memory_space<vmem>>, vector<8x8x32xf32>
    %93 = vector.shape_cast %92 : vector<8x8x32xf32> to vector<64x32xf32>
    %c1_115 = arith.constant 1 : index
    %c0_116 = arith.constant 0 : index
    %c0_117 = arith.constant 0 : index
    %c0_118 = arith.constant 0 : index
    %94 = vector.load %arg4[%c1_115, %c0_116, %c0_117, %c0_118] : memref<3x3x32x32xf32, #tpu.memory_space<vmem>>, vector<1x1x32x32xf32>
    %95 = vector.shape_cast %94 : vector<1x1x32x32xf32> to vector<32x32xf32>
    %cst_119 = arith.constant dense<0.000000e+00> : vector<64x32xf32>
    %96 = tpu.matmul %93, %95, %cst_119 {dimension_numbers = #tpu.dot_dimension_numbers<[1], [0], [0], [1], [0, 0, 1, 1], [], []>} : vector<64x32xf32>, vector<32x32xf32>, vector<64x32xf32> -> vector<64x32xf32>
    %97 = arith.addf %91, %96 : vector<64x32xf32>
    %c1_120 = arith.constant 1 : index
    %c1_121 = arith.constant 1 : index
    %c0_122 = arith.constant 0 : index
    %98 = vector.load %arg7[%c1_120, %c1_121, %c0_122] : memref<10x10x32xf32, #tpu.memory_space<vmem>>, vector<8x8x32xf32>
    %99 = vector.shape_cast %98 : vector<8x8x32xf32> to vector<64x32xf32>
    %c1_123 = arith.constant 1 : index
    %c1_124 = arith.constant 1 : index
    %c0_125 = arith.constant 0 : index
    %c0_126 = arith.constant 0 : index
    %100 = vector.load %arg4[%c1_123, %c1_124, %c0_125, %c0_126] : memref<3x3x32x32xf32, #tpu.memory_space<vmem>>, vector<1x1x32x32xf32>
    %101 = vector.shape_cast %100 : vector<1x1x32x32xf32> to vector<32x32xf32>
    %cst_127 = arith.constant dense<0.000000e+00> : vector<64x32xf32>
    %102 = tpu.matmul %99, %101, %cst_127 {dimension_numbers = #tpu.dot_dimension_numbers<[1], [0], [0], [1], [0, 0, 1, 1], [], []>} : vector<64x32xf32>, vector<32x32xf32>, vector<64x32xf32> -> vector<64x32xf32>
    %103 = arith.addf %97, %102 : vector<64x32xf32>
    %c1_128 = arith.constant 1 : index
    %c2_129 = arith.constant 2 : index
    %c0_130 = arith.constant 0 : index
    %104 = vector.load %arg7[%c1_128, %c2_129, %c0_130] : memref<10x10x32xf32, #tpu.memory_space<vmem>>, vector<8x8x32xf32>
    %105 = vector.shape_cast %104 : vector<8x8x32xf32> to vector<64x32xf32>
    %c1_131 = arith.constant 1 : index
    %c2_132 = arith.constant 2 : index
    %c0_133 = arith.constant 0 : index
    %c0_134 = arith.constant 0 : index
    %106 = vector.load %arg4[%c1_131, %c2_132, %c0_133, %c0_134] : memref<3x3x32x32xf32, #tpu.memory_space<vmem>>, vector<1x1x32x32xf32>
    %107 = vector.shape_cast %106 : vector<1x1x32x32xf32> to vector<32x32xf32>
    %cst_135 = arith.constant dense<0.000000e+00> : vector<64x32xf32>
    %108 = tpu.matmul %105, %107, %cst_135 {dimension_numbers = #tpu.dot_dimension_numbers<[1], [0], [0], [1], [0, 0, 1, 1], [], []>} : vector<64x32xf32>, vector<32x32xf32>, vector<64x32xf32> -> vector<64x32xf32>
    %109 = arith.addf %103, %108 : vector<64x32xf32>
    %c2_136 = arith.constant 2 : index
    %c0_137 = arith.constant 0 : index
    %c0_138 = arith.constant 0 : index
    %110 = vector.load %arg7[%c2_136, %c0_137, %c0_138] : memref<10x10x32xf32, #tpu.memory_space<vmem>>, vector<8x8x32xf32>
    %111 = vector.shape_cast %110 : vector<8x8x32xf32> to vector<64x32xf32>
    %c2_139 = arith.constant 2 : index
    %c0_140 = arith.constant 0 : index
    %c0_141 = arith.constant 0 : index
    %c0_142 = arith.constant 0 : index
    %112 = vector.load %arg4[%c2_139, %c0_140, %c0_141, %c0_142] : memref<3x3x32x32xf32, #tpu.memory_space<vmem>>, vector<1x1x32x32xf32>
    %113 = vector.shape_cast %112 : vector<1x1x32x32xf32> to vector<32x32xf32>
    %cst_143 = arith.constant dense<0.000000e+00> : vector<64x32xf32>
    %114 = tpu.matmul %111, %113, %cst_143 {dimension_numbers = #tpu.dot_dimension_numbers<[1], [0], [0], [1], [0, 0, 1, 1], [], []>} : vector<64x32xf32>, vector<32x32xf32>, vector<64x32xf32> -> vector<64x32xf32>
    %115 = arith.addf %109, %114 : vector<64x32xf32>
    %c2_144 = arith.constant 2 : index
    %c1_145 = arith.constant 1 : index
    %c0_146 = arith.constant 0 : index
    %116 = vector.load %arg7[%c2_144, %c1_145, %c0_146] : memref<10x10x32xf32, #tpu.memory_space<vmem>>, vector<8x8x32xf32>
    %117 = vector.shape_cast %116 : vector<8x8x32xf32> to vector<64x32xf32>
    %c2_147 = arith.constant 2 : index
    %c1_148 = arith.constant 1 : index
    %c0_149 = arith.constant 0 : index
    %c0_150 = arith.constant 0 : index
    %118 = vector.load %arg4[%c2_147, %c1_148, %c0_149, %c0_150] : memref<3x3x32x32xf32, #tpu.memory_space<vmem>>, vector<1x1x32x32xf32>
    %119 = vector.shape_cast %118 : vector<1x1x32x32xf32> to vector<32x32xf32>
    %cst_151 = arith.constant dense<0.000000e+00> : vector<64x32xf32>
    %120 = tpu.matmul %117, %119, %cst_151 {dimension_numbers = #tpu.dot_dimension_numbers<[1], [0], [0], [1], [0, 0, 1, 1], [], []>} : vector<64x32xf32>, vector<32x32xf32>, vector<64x32xf32> -> vector<64x32xf32>
    %121 = arith.addf %115, %120 : vector<64x32xf32>
    %c2_152 = arith.constant 2 : index
    %c2_153 = arith.constant 2 : index
    %c0_154 = arith.constant 0 : index
    %122 = vector.load %arg7[%c2_152, %c2_153, %c0_154] : memref<10x10x32xf32, #tpu.memory_space<vmem>>, vector<8x8x32xf32>
    %123 = vector.shape_cast %122 : vector<8x8x32xf32> to vector<64x32xf32>
    %c2_155 = arith.constant 2 : index
    %c2_156 = arith.constant 2 : index
    %c0_157 = arith.constant 0 : index
    %c0_158 = arith.constant 0 : index
    %124 = vector.load %arg4[%c2_155, %c2_156, %c0_157, %c0_158] : memref<3x3x32x32xf32, #tpu.memory_space<vmem>>, vector<1x1x32x32xf32>
    %125 = vector.shape_cast %124 : vector<1x1x32x32xf32> to vector<32x32xf32>
    %cst_159 = arith.constant dense<0.000000e+00> : vector<64x32xf32>
    %126 = tpu.matmul %123, %125, %cst_159 {dimension_numbers = #tpu.dot_dimension_numbers<[1], [0], [0], [1], [0, 0, 1, 1], [], []>} : vector<64x32xf32>, vector<32x32xf32>, vector<64x32xf32> -> vector<64x32xf32>
    %127 = arith.addf %121, %126 : vector<64x32xf32>
    %c0_160 = arith.constant 0 : index
    %c0_161 = arith.constant 0 : index
    %128 = vector.load %arg5[%c0_160, %c0_161] : memref<1x32xf32, #tpu.memory_space<vmem>>, vector<1x32xf32>
    %129 = vector.broadcast %128 : vector<1x32xf32> to vector<64x32xf32>
    %130 = arith.addf %127, %129 : vector<64x32xf32>
    %cst_162 = arith.constant 0.000000e+00 : f32
    %131 = vector.broadcast %cst_162 : f32 to vector<64x32xf32>
    %132 = arith.maximumf %130, %131 : vector<64x32xf32>
    %c0_163 = arith.constant 0 : index
    %c0_164 = arith.constant 0 : index
    %c0_165 = arith.constant 0 : index
    %133 = vector.load %arg6[%c0_163, %c0_164, %c0_165] : memref<1x64x32xf32, #tpu.memory_space<vmem>>, vector<1x64x32xf32>
    %134 = vector.shape_cast %133 : vector<1x64x32xf32> to vector<64x32xf32>
    %135 = vector.shape_cast %132 : vector<64x32xf32> to vector<1x64x32xf32>
    tpu.vector_store %arg6[%c0_163, %c0_164, %c0_165], %135 {strides = array<i32>} : memref<1x64x32xf32, #tpu.memory_space<vmem>>, vector<1x64x32xf32>,
    return
  }
  func.func @transform_0(%arg0: i32) -> (i32, i32, i32, i32) {
    %c0_i32 = arith.constant 0 : i32
    %c0_i32_0 = arith.constant 0 : i32
    %c0_i32_1 = arith.constant 0 : i32
    %c0_i32_2 = arith.constant 0 : i32
    return %arg0, %c0_i32, %c0_i32_0, %c0_i32_1 : i32, i32, i32, i32
  }
  func.func @transform_1(%arg0: i32) -> (i32, i32, i32, i32) {
    %c0_i32 = arith.constant 0 : i32
    %c0_i32_0 = arith.constant 0 : i32
    %c0_i32_1 = arith.constant 0 : i32
    %c0_i32_2 = arith.constant 0 : i32
    %c0_i32_3 = arith.constant 0 : i32
    return %c0_i32, %c0_i32_0, %c0_i32_1, %c0_i32_2 : i32, i32, i32, i32
  }
  func.func @transform_2(%arg0: i32) -> (i32, i32) {
    %c0_i32 = arith.constant 0 : i32
    %c0_i32_0 = arith.constant 0 : i32
    %c0_i32_1 = arith.constant 0 : i32
    return %c0_i32, %c0_i32_0 : i32, i32
  }
  func.func @transform_3(%arg0: i32) -> (i32, i32, i32, i32) {
    %c0_i32 = arith.constant 0 : i32
    %c0_i32_0 = arith.constant 0 : i32
    %c0_i32_1 = arith.constant 0 : i32
    %c0_i32_2 = arith.constant 0 : i32
    %c0_i32_3 = arith.constant 0 : i32
    return %c0_i32, %c0_i32_0, %c0_i32_1, %c0_i32_2 : i32, i32, i32, i32
  }
  func.func @transform_4(%arg0: i32) -> (i32, i32) {
    %c0_i32 = arith.constant 0 : i32
    %c0_i32_0 = arith.constant 0 : i32
    %c0_i32_1 = arith.constant 0 : i32
    return %c0_i32, %c0_i32_0 : i32, i32
  }
  func.func @transform_5(%arg0: i32) -> (i32, i32, i32) {
    %c0_i32 = arith.constant 0 : i32
    %c0_i32_0 = arith.constant 0 : i32
    %c0_i32_1 = arith.constant 0 : i32
    return %arg0, %c0_i32, %c0_i32_0 : i32, i32, i32
  }
}

</mosaic_0001>

<bundles_post_ra>
// kernel: tpu_custom_call.1
= control target key start
LH: loop header
LB: loop body
LE: loop exit
PB: predicated region body
PF: predicated region fallthrough
CT: control target
= control target key end

     0   :  { %s4094_s18 = smov 0   ;;  %s4695_s0 = inlined_call_operand.vmem [shape: f32[8,9,9,16], index: 0, kind: input, shape index: {}]   ;;  %s4696_s1 = inlined_call_operand.vmem [shape: f32[3,3,16,32], index: 1, kind: input, shape index: {}]   ;;  %s4697_s2 = inlined_call_operand.vmem [shape: f32[1,32], index: 2, kind: input, shape index: {}]   ;;  %s4698_s3 = inlined_call_operand.vmem [shape: f32[3,3,32,32], index: 3, kind: input, shape index: {}]   ;;  %s4699_s4 = inlined_call_operand.vmem [shape: f32[1,32], index: 4, kind: input, shape index: {}]   ;;  %s4700_s5 = inlined_call_operand.vmem [shape: f32[2,64,32], index: 5, kind: output, shape index: {}]  }
   0x1 LB: > { %s4100_s19 = sadd.s32 4294967295, %s4061_s18   ;;  %p3029_p0 = scmp.ge.s32.totalorder %s4061_s18, 1  ;;  %s4061_s18 = sphi %s4094_s18, %s15_s18  }
   0x2   : > { %p189_p1 = scmp.lt.s32.totalorder %s4061_s18, 3 }
   0x4   : > { %p190_p2 = pnand %p3029_p0, %p189_p1 }
   0x5   : > { %v3042_v0 = vld [vmem:[%s4696_s1 + $0x10] sm:$0xff] (!%p190_p2)  ;;  %v3043_v1 = vld [vmem:[%s4696_s1 + $0x18] sm:$0xff] (!%p190_p2)  ;;  %s3030_s24 = sshll.u32 (!%p190_p2), %s4100_s19, 2  ;;  %v238_v2 = vld [vmem:[%s4696_s1] sm:$0xff] (!%p190_p2)  ;;  %vm252_vm0 = vcmask (!%p190_p2), 130048   ;;  %vm1574_vm1 = vcmask (!%p190_p2), 261120  }
   0x6   : > { %193 = sbr.rel (%p190_p2) target bundleno = 730 (0x2da), region = 40  ;;  %v3809_v3 = vpack.c.bf16 (!%p190_p2), %v3043_v1, %v3042_v0  ;;  %p219_p3 = scmp.lt.s32.totalorder (!%p190_p2), %s3030_s24, 7  ;;  %v239_v4 = vld [vmem:[%s4696_s1 + $0x8] sm:$0xff] (!%p190_p2)  ;;  %v3060_v6 = vld [vmem:[%s4696_s1 + $0x20] sm:$0xff] (!%p190_p2)  ;;  %v3078_v18 = vld [vmem:[%s4696_s1 + $0x30] sm:$0xff] (!%p190_p2)  ;;  %vm1576_vm2 = vcmask (!%p190_p2), 254976  }
   0x7   : > { %v3813_v5 = vpack.c.bf16 (!%p190_p2), %v239_v4, %v238_v2  ;;  %v3061_v7 = vld [vmem:[%s4696_s1 + $0x28] sm:$0xff] (!%p190_p2)  ;;  %v3079_v19 = vld [vmem:[%s4696_s1 + $0x38] sm:$0xff] (!%p190_p2)  ;;  %v3096_v29 = vld [vmem:[%s4696_s1 + $0x40] sm:$0xff] (!%p190_p2)  ;;  %p225_p4 = scmp.lt.s32.totalorder (!%p190_p2), %s4100_s19, 1 }
   0x8   : > { %3810 = vmatprep.subr.bf16.mxu0 (!%p190_p2), %v3809_v3  ;;  %v3817_v11 = vpack.c.bf16 (!%p190_p2), %v3061_v7, %v3060_v6  ;;  %v3821_v22 = vpack.c.bf16 (!%p190_p2), %v3079_v19, %v3078_v18  ;;  %v3097_v30 = vld [vmem:[%s4696_s1 + $0x48] sm:$0xff] (!%p190_p2)  ;;  %v3114_v40 = vld [vmem:[%s4696_s1 + $0x50] sm:$0xff] (!%p190_p2)  ;;  %v3115_v41 = vld [vmem:[%s4696_s1 + $0x58] sm:$0xff] (!%p190_p2) }
   0x9   : > { %3812 = vmatpush3.bf16.msra.mxu0 (!%p190_p2), %v3809_v3  ;;  %v3825_v33 = vpack.c.bf16 (!%p190_p2), %v3097_v30, %v3096_v29  ;;  %v3829_v44 = vpack.c.bf16 (!%p190_p2), %v3115_v41, %v3114_v40  ;;  %v3132_v51 = vld [vmem:[%s4696_s1 + $0x60] sm:$0xff] (!%p190_p2)  ;;  %v3133_v52 = vld [vmem:[%s4696_s1 + $0x68] sm:$0xff] (!%p190_p2)  ;;  %v3150_v62 = vld [vmem:[%s4696_s1 + $0x70] sm:$0xff] (!%p190_p2) }
   0xa   : > { %3814 = vmatprep.subr.bf16.mxu0 (!%p190_p2), %v3813_v5  ;;  %v3833_v55 = vpack.c.bf16 (!%p190_p2), %v3133_v52, %v3132_v51  ;;  %v3151_v63 = vld [vmem:[%s4696_s1 + $0x78] sm:$0xff] (!%p190_p2)  ;;  %v1615_v41 = vld [vmem:[%s4698_s3 + $0x10] sm:$0xff] (!%p190_p2)  ;;  %v3199_v51 = vld [vmem:[%s4698_s3 + $0x40] sm:$0xff] (!%p190_p2) }
   0xb   : > { %v3837_v2 = vpack.c.bf16 (!%p190_p2), %v3151_v63, %v3150_v62  ;;  %v3182_v19 = vld [vmem:[%s4698_s3 + $0x38] sm:$0xff] (!%p190_p2)  ;;  %v3200_v52 = vld [vmem:[%s4698_s3 + $0x48] sm:$0xff] (!%p190_p2) }
   0xd   : > { %s4702_s24 = smov (!%p219_p3, %s3030_s24), 7  ;;  %s4704_s19 = smov (!%p225_p4, %s4100_s19), 1 }
   0xe   : > { %s4045_s29 = smul.u32 144, %s4702_s24  ;;  %s3286_s22 = sshll.u32 %s4704_s19, 6 }
   0xf   : > { %s229_s25 = scalar_lea.vmem %s4700_s5, %s3286_s22 }
  0x10   : > { %s4126_s11 = scalar_lea.vmem %s4695_s0, %s4045_s29 }
  0x11   : > { %v3034_v8 = vld [vmem:[%s4126_s11 + $0x90] sm:$0xff]  ;;  %v4130_v9 = vld [vmem:[%s4126_s11 + $0xa0] sm:$0xff] }
  0x12   : > { %v4133_v10 = vld [vmem:[%s4126_s11 + $0xb0] sm:$0xff]  ;;  %3489 = vmatprep.mubr.msk.f32.mxu0 %vm252_vm0, %v3034_v8  ;;  %v4141_v12 = vld [vmem:[%s4126_s11 + $0xc0] sm:$0xff] }
  0x13   : > { %3490 = vmatmul.mubr.msk.f32.vlgmr.msra.gmra.mrb[0].mxu0 %vm252_vm0, %v4130_v9  ;;  %v4144_v13 = vld [vmem:[%s4126_s11 + $0xd0] sm:$0xff]  ;;  %v4151_v14 = vld [vmem:[%s4126_s11 + $0xe0] sm:$0xff] }
  0x14   : > { %3816 = vmatpush3.bf16.msra.mxu0 %v3813_v5  ;;  %3492 = vmatprep.mubr.msk.f32.mxu0 %vm252_vm0, %v4133_v10  ;;  %v4154_v15 = vld [vmem:[%s4126_s11 + $0xf0] sm:$0xff]  ;;  %v4161_v16 = vld [vmem:[%s4126_s11 + $0x100] sm:$0xff] }
  0x15   : > { %3818 = vmatprep.subr.bf16.mxu0 %v3817_v11  ;;  %v230_v17 = vld [vmem:[%s4126_s11] sm:$0xff]  ;;  %v4174_v20 = vld [vmem:[%s4126_s11 + $0x10] sm:$0xff] }
  0x16   : > { %v4177_v21 = vld [vmem:[%s4126_s11 + $0x20] sm:$0xff]  ;;  %v4184_v23 = vld [vmem:[%s4126_s11 + $0x30] sm:$0xff] }
  0x17   : > { %3493 = vmatmul.mubr.msk.f32.gmra.mrb[2].mxu0 %vm252_vm0, %v4141_v12  ;;  %v4187_v24 = vld [vmem:[%s4126_s11 + $0x40] sm:$0xff]  ;;  %v4194_v25 = vld [vmem:[%s4126_s11 + $0x50] sm:$0xff] }
  0x18   : > { %3495 = vmatprep.mubr.msk.f32.mxu0 %vm252_vm0, %v4144_v13  ;;  %v4197_v26 = vld [vmem:[%s4126_s11 + $0x60] sm:$0xff]  ;;  %v4204_v27 = vld [vmem:[%s4126_s11 + $0x70] sm:$0xff] }
  0x19   : > { %v511_v28 = vld [vmem:[%s4126_s11 + $0x1] sm:$0xff]  ;;  %v4217_v31 = vld [vmem:[%s4126_s11 + $0x11] sm:$0xff] }
  0x1a   : > { %v4220_v32 = vld [vmem:[%s4126_s11 + $0x21] sm:$0xff]  ;;  %v4227_v34 = vld [vmem:[%s4126_s11 + $0x31] sm:$0xff] }
  0x1b   : > { %3496 = vmatmul.mubr.msk.f32.gmra.mrb[4].mxu0 %vm252_vm0, %v4151_v14  ;;  %v4230_v35 = vld [vmem:[%s4126_s11 + $0x41] sm:$0xff]  ;;  %v4237_v36 = vld [vmem:[%s4126_s11 + $0x51] sm:$0xff] }
  0x1c   : > { %3498 = vmatprep.mubr.msk.f32.mxu0 %vm252_vm0, %v4154_v15  ;;  %v4240_v37 = vld [vmem:[%s4126_s11 + $0x61] sm:$0xff]  ;;  %v4247_v38 = vld [vmem:[%s4126_s11 + $0x71] sm:$0xff] }
  0x1d   : > { %v3070_v39 = vld [vmem:[%s4126_s11 + $0x120] sm:$0xff]  ;;  %v3071_v42 = vld [vmem:[%s4126_s11 + $0x130] sm:$0xff] }
  0x1e   : > { %v3072_v43 = vld [vmem:[%s4126_s11 + $0x140] sm:$0xff]  ;;  %v3073_v45 = vld [vmem:[%s4126_s11 + $0x150] sm:$0xff] }
  0x1f   : > { %3499 = vmatmul.mubr.msk.f32.gmra.mrb[6].mxu0 %vm252_vm0, %v4161_v16  ;;  %v3074_v46 = vld [vmem:[%s4126_s11 + $0x160] sm:$0xff]  ;;  %v3075_v47 = vld [vmem:[%s4126_s11 + $0x170] sm:$0xff] }
  0x20   : > { %3505 = vmatprep.mubr.msk.f32.mxu0 %vm252_vm0, %v230_v17  ;;  %v3076_v48 = vld [vmem:[%s4126_s11 + $0x180] sm:$0xff]  ;;  %v3077_v49 = vld [vmem:[%s4126_s11 + $0x190] sm:$0xff] }
  0x21   : > { %v3088_v50 = vld [vmem:[%s4126_s11 + $0x1b0] sm:$0xff]  ;;  %v3089_v53 = vld [vmem:[%s4126_s11 + $0x1c0] sm:$0xff] }
  0x22   : > { %v3090_v54 = vld [vmem:[%s4126_s11 + $0x1d0] sm:$0xff]  ;;  %v3091_v56 = vld [vmem:[%s4126_s11 + $0x1e0] sm:$0xff] }
  0x23   : > { %3506 = vmatmul.mubr.msk.f32.vlgmr.msra.gmra.mrb[0].mxu0 %vm252_vm0, %v4174_v20  ;;  %v3092_v57 = vld [vmem:[%s4126_s11 + $0x1f0] sm:$0xff]  ;;  %v3093_v58 = vld [vmem:[%s4126_s11 + $0x200] sm:$0xff] }
  0x24   : > { %3820 = vmatpush3.bf16.msra.mxu0 %v3817_v11  ;;  %3508 = vmatprep.mubr.msk.f32.mxu0 %vm252_vm0, %v4177_v21  ;;  %v3094_v59 = vld [vmem:[%s4126_s11 + $0x210] sm:$0xff]  ;;  %v3095_v60 = vld [vmem:[%s4126_s11 + $0x220] sm:$0xff]  ;;  %v3169_v11 = vld [vmem:[%s4696_s1 + $0x88] sm:$0xff] }
  0x25   : > { %3822 = vmatprep.subr.bf16.mxu0 %v3821_v22  ;;  %v3106_v61 = vld [vmem:[%s4126_s11 + $0x121] sm:$0xff]  ;;  %v3107_v0 = vld [vmem:[%s4126_s11 + $0x131] sm:$0xff] }
  0x26   : > { %v3108_v1 = vld [vmem:[%s4126_s11 + $0x141] sm:$0xff]  ;;  %v3109_v3 = vld [vmem:[%s4126_s11 + $0x151] sm:$0xff] }
  0x27   : > { %3509 = vmatmul.mubr.msk.f32.gmra.mrb[2].mxu0 %vm252_vm0, %v4184_v23  ;;  %v3110_v4 = vld [vmem:[%s4126_s11 + $0x161] sm:$0xff]  ;;  %v3111_v5 = vld [vmem:[%s4126_s11 + $0x171] sm:$0xff] }
  0x28   : > { %3511 = vmatprep.mubr.msk.f32.mxu0 %vm252_vm0, %v4187_v24  ;;  %v3112_v6 = vld [vmem:[%s4126_s11 + $0x181] sm:$0xff]  ;;  %v3113_v7 = vld [vmem:[%s4126_s11 + $0x191] sm:$0xff] }
  0x29   : > { %v3168_v8 = vld [vmem:[%s4696_s1 + $0x80] sm:$0xff] }
  0x2a   : > { %v3841_v17 = vpack.c.bf16 %v3169_v11, %v3168_v8  ;;  %v3131_v18 = vld [vmem:[%s4126_s11 + $0x80] sm:$0xff] }
  0x2b   : > { %3512 = vmatmul.mubr.msk.f32.gmra.mrb[4].mxu0 %vm252_vm0, %v4194_v25 }
  0x2c   : > { %3514 = vmatprep.mubr.msk.f32.mxu0 %vm252_vm0, %v4197_v26 }
  0x2f   : > { %3515 = vmatmul.mubr.msk.f32.gmra.mrb[6].mxu0 %vm252_vm0, %v4204_v27 }
  0x30   : > { %3521 = vmatprep.mubr.msk.f32.mxu0 %vm252_vm0, %v511_v28 }
  0x33   : > { %3522 = vmatmul.mubr.msk.f32.vlgmr.msra.gmra.mrb[0].mxu0 %vm252_vm0, %v4217_v31 }
  0x34   : > { %3824 = vmatpush3.bf16.msra.mxu0 %v3821_v22  ;;  %3524 = vmatprep.mubr.msk.f32.mxu0 %vm252_vm0, %v4220_v32  ;;  %v1613_v22 = vld [vmem:[%s4698_s3] sm:$0xff] }
  0x35   : > { %3826 = vmatprep.subr.bf16.mxu0 %v3825_v33 }
  0x37   : > { %3525 = vmatmul.mubr.msk.f32.gmra.mrb[2].mxu0 %vm252_vm0, %v4227_v34 }
  0x38   : > { %3527 = vmatprep.mubr.msk.f32.mxu0 %vm252_vm0, %v4230_v35 }
  0x3b   : > { %3528 = vmatmul.mubr.msk.f32.gmra.mrb[4].mxu0 %vm252_vm0, %v4237_v36 }
  0x3c   : > { %3530 = vmatprep.mubr.msk.f32.mxu0 %vm252_vm0, %v4240_v37 }
  0x3f   : > { %3531 = vmatmul.mubr.msk.f32.gmra.mrb[6].mxu0 %vm252_vm0, %v4247_v38 }
  0x40   : > { %3537 = vmatprep.mubr.msk.f32.mxu0 %vm252_vm0, %v3070_v39 }
  0x43   : > { %3538 = vmatmul.mubr.msk.f32.vlgmr.msra.gmra.mrb[0].mxu0 %vm252_vm0, %v3071_v42  ;;  %v1616_v42 = vld [vmem:[%s4698_s3 + $0x18] sm:$0xff] }
  0x44   : > { %3828 = vmatpush3.bf16.msra.mxu0 %v3825_v33  ;;  %3540 = vmatprep.mubr.msk.f32.mxu0 %vm252_vm0, %v3072_v43 }
  0x45   : > { %3830 = vmatprep.subr.bf16.mxu0 %v3829_v44 }
  0x47   : > { %3541 = vmatmul.mubr.msk.f32.gmra.mrb[2].mxu0 %vm252_vm0, %v3073_v45 }
  0x48   : > { %3543 = vmatprep.mubr.msk.f32.mxu0 %vm252_vm0, %v3074_v46 }
  0x4b   : > { %3544 = vmatmul.mubr.msk.f32.gmra.mrb[4].mxu0 %vm252_vm0, %v3075_v47  ;;  %v3857_v47 = vpack.c.bf16 %v1616_v42, %v1615_v41  ;;  %v3249_v41 = vld [vmem:[%s4698_s3 + $0xd0] sm:$0xff]  ;;  %v3250_v42 = vld [vmem:[%s4698_s3 + $0xd8] sm:$0xff] }
  0x4c   : > { %3546 = vmatprep.mubr.msk.f32.mxu0 %vm252_vm0, %v3076_v48 }
  0x4f   : > { %3547 = vmatmul.mubr.msk.f32.gmra.mrb[6].mxu0 %vm252_vm0, %v3077_v49 }
  0x50   : > { %3553 = vmatprep.mubr.msk.f32.mxu0 %vm252_vm0, %v3088_v50 }
  0x53   : > { %3554 = vmatmul.mubr.msk.f32.vlgmr.msra.gmra.mrb[0].mxu0 %vm252_vm0, %v3089_v53 }
  0x54   : > { %3832 = vmatpush3.bf16.msra.mxu0 %v3829_v44  ;;  %3556 = vmatprep.mubr.msk.f32.mxu0 %vm252_vm0, %v3090_v54 }
  0x55   : > { %3834 = vmatprep.subr.bf16.mxu0 %v3833_v55 }
  0x57   : > { %3557 = vmatmul.mubr.msk.f32.gmra.mrb[2].mxu0 %vm252_vm0, %v3091_v56 }
  0x58   : > { %3559 = vmatprep.mubr.msk.f32.mxu0 %vm252_vm0, %v3092_v57  ;;  %v3861_v57 = vpack.c.bf16 %v3200_v52, %v3199_v51  ;;  %v3271_v51 = vld [vmem:[%s4698_s3 + $0x100] sm:$0xff]  ;;  %v3272_v52 = vld [vmem:[%s4698_s3 + $0x108] sm:$0xff] }
  0x5b   : > { %3560 = vmatmul.mubr.msk.f32.gmra.mrb[4].mxu0 %vm252_vm0, %v3093_v58 }
  0x5c   : > { %3562 = vmatprep.mubr.msk.f32.mxu0 %vm252_vm0, %v3094_v59 }
  0x5f   : > { %3563 = vmatmul.mubr.msk.f32.gmra.mrb[6].mxu0 %vm252_vm0, %v3095_v60 }
  0x60   : > { %3569 = vmatprep.mubr.msk.f32.mxu0 %vm252_vm0, %v3106_v61 }
  0x63   : > { %3570 = vmatmul.mubr.msk.f32.vlgmr.msra.gmra.mrb[0].mxu0 %vm252_vm0, %v3107_v0  ;;  %v3201_v0 = vld [vmem:[%s4698_s3 + $0x50] sm:$0xff] }
  0x64   : > { %3836 = vmatpush3.bf16.msra.mxu0 %v3833_v55  ;;  %3572 = vmatprep.mubr.msk.f32.mxu0 %vm252_vm0, %v3108_v1  ;;  %v3202_v1 = vld [vmem:[%s4698_s3 + $0x58] sm:$0xff] }
  0x65   : > { %3838 = vmatprep.subr.bf16.mxu0 %v3837_v2 }
  0x67   : > { %3573 = vmatmul.mubr.msk.f32.gmra.mrb[2].mxu0 %vm252_vm0, %v3109_v3 }
  0x68   : > { %3575 = vmatprep.mubr.msk.f32.mxu0 %vm252_vm0, %v3110_v4  ;;  %v3211_v4 = vld [vmem:[%s4698_s3 + $0x60] sm:$0xff] }
  0x6b   : > { %3576 = vmatmul.mubr.msk.f32.gmra.mrb[4].mxu0 %vm252_vm0, %v3111_v5  ;;  %v3212_v5 = vld [vmem:[%s4698_s3 + $0x68] sm:$0xff] }
  0x6c   : > { %3578 = vmatprep.mubr.msk.f32.mxu0 %vm252_vm0, %v3112_v6 }
  0x6f   : > { %3579 = vmatmul.mubr.msk.f32.gmra.mrb[6].mxu0 %vm252_vm0, %v3113_v7  ;;  %v3869_v7 = vpack.c.bf16 %v3212_v5, %v3211_v4 }
  0x70   : > { %3585 = vmatprep.mubr.msk.f32.mxu0 %vm252_vm0, %v4174_v20 }
  0x73   : > { %3586 = vmatmul.mubr.msk.f32.vlgmr.msra.gmra.mrb[0].mxu0 %vm252_vm0, %v4177_v21 }
  0x74   : > { %3840 = vmatpush3.bf16.msra.mxu0 %v3837_v2  ;;  %3588 = vmatprep.mubr.msk.f32.mxu0 %vm252_vm0, %v4184_v23  ;;  %v1614_v23 = vld [vmem:[%s4698_s3 + $0x8] sm:$0xff]  ;;  %v3865_v2 = vpack.c.bf16 %v3202_v1, %v3201_v0 }
  0x75   : > { %3842 = vmatprep.subr.bf16.mxu0 %v3841_v17 }
  0x77   : > { %3589 = vmatmul.mubr.msk.f32.gmra.mrb[2].mxu0 %vm252_vm0, %v4187_v24  ;;  %v3853_v24 = vpack.c.bf16 %v1614_v23, %v1613_v22 }
  0x78   : > { %3591 = vmatprep.mubr.msk.f32.mxu0 %vm252_vm0, %v4194_v25  ;;  %v3178_v25 = vld [vmem:[%s4697_s2] ss:$0 sm:$0xff] }
  0x7b   : > { %3592 = vmatmul.mubr.msk.f32.gmra.mrb[4].mxu0 %vm252_vm0, %v4197_v26 }
  0x7c   : > { %3594 = vmatprep.mubr.msk.f32.mxu0 %vm252_vm0, %v4204_v27 }
  0x7f   : > { %3595 = vmatmul.mubr.msk.f32.gmra.mrb[6].mxu0 %vm252_vm0, %v3131_v18 }
  0x80   : > { %3601 = vmatprep.mubr.msk.f32.mxu0 %vm252_vm0, %v4130_v9  ;;  %v3149_v9 = vld [vmem:[%s4126_s11 + $0x110] sm:$0xff] }
  0x83   : > { %3602 = vmatmul.mubr.msk.f32.vlgmr.msra.gmra.mrb[0].mxu0 %vm252_vm0, %v4133_v10  ;;  %v3167_v10 = vld [vmem:[%s4126_s11 + $0x81] sm:$0xff] }
  0x84   : > { %3844 = vmatpush3.bf16.msra.mxu0 %v3841_v17  ;;  %3604 = vmatprep.mubr.msk.f32.mxu0 %vm252_vm0, %v4141_v12  ;;  %v3179_v12 = vld [vmem:[%s4698_s3 + $0x20] sm:$0xff] }
  0x87   : > { %3605 = vmatmul.mubr.msk.f32.gmra.mrb[2].mxu0 %vm252_vm0, %v4144_v13  ;;  %v3180_v13 = vld [vmem:[%s4698_s3 + $0x28] sm:$0xff] }
  0x88   : > { %3607 = vmatprep.mubr.msk.f32.mxu0 %vm252_vm0, %v4151_v14  ;;  %v4063_v14 = vmov 0.0  }
  0x89   : > { %1580 = vst.msk [vmem:[#allocation2 + $0x20] sm:$0xff] %vm1574_vm1, %v4063_v14  ;;  %1575 = vst.msk [vmem:[#allocation2] sm:$0xff] %vm1574_vm1, %v4063_v14 }
  0x8a   : > { %1581 = vst.msk [vmem:[#allocation2 + $0x28] sm:$0x3] %vm1576_vm2, %v4063_v14  ;;  %1577 = vst.msk [vmem:[#allocation2 + $0x8] sm:$0x3] %vm1576_vm2, %v4063_v14 }
  0x8b   : > { %3608 = vmatmul.mubr.msk.f32.gmra.mrb[4].mxu0 %vm252_vm0, %v4154_v15  ;;  %1578 = vst.msk [vmem:[#allocation2 + $0x10] sm:$0xff] %vm1574_vm1, %v4063_v14  ;;  %1582 = vst.msk [vmem:[#allocation2 + $0x30] sm:$0xff] %vm1574_vm1, %v4063_v14  ;;  %v3845_v15 = vpack.c.bf16 %v3180_v13, %v3179_v12  ;;  %v3213_v12 = vld [vmem:[%s4698_s3 + $0x70] sm:$0xff]  ;;  %v3214_v13 = vld [vmem:[%s4698_s3 + $0x78] sm:$0xff] }
  0x8c   : > { %3610 = vmatprep.mubr.msk.f32.mxu0 %vm252_vm0, %v4161_v16  ;;  %1579 = vst.msk [vmem:[#allocation2 + $0x18] sm:$0x3] %vm1576_vm2, %v4063_v14  ;;  %1583 = vst.msk [vmem:[#allocation2 + $0x38] sm:$0x3] %vm1576_vm2, %v4063_v14  ;;  %v3181_v16 = vld [vmem:[%s4698_s3 + $0x30] sm:$0xff] }
  0x8d   : > { %1584 = vst.msk [vmem:[#allocation2 + $0x40] sm:$0xff] %vm1574_vm1, %v4063_v14  ;;  %1586 = vst.msk [vmem:[#allocation2 + $0x50] sm:$0xff] %vm1574_vm1, %v4063_v14  ;;  %3846 = vmatprep.subr.bf16.mxu1 %v3845_v15  ;;  %v3849_v20 = vpack.c.bf16 %v3182_v19, %v3181_v16  ;;  %v3223_v16 = vld [vmem:[%s4698_s3 + $0x80] sm:$0xff]  ;;  %v3224_v19 = vld [vmem:[%s4698_s3 + $0x88] sm:$0xff] }
  0x8e   : > { %1585 = vst.msk [vmem:[#allocation2 + $0x48] sm:$0x3] %vm1576_vm2, %v4063_v14  ;;  %1587 = vst.msk [vmem:[#allocation2 + $0x58] sm:$0x3] %vm1576_vm2, %v4063_v14  ;;  %3848 = vmatpush3.bf16.msra.mxu1 %v3845_v15 }
  0x8f   : > { %3611 = vmatmul.mubr.msk.f32.gmra.mrb[6].mxu0 %vm252_vm0, %v3149_v9  ;;  %1588 = vst.msk [vmem:[#allocation2 + $0x60] sm:$0xff] %vm1574_vm1, %v4063_v14  ;;  %1590 = vst.msk [vmem:[#allocation2 + $0x70] sm:$0xff] %vm1574_vm1, %v4063_v14  ;;  %3850 = vmatprep.subr.bf16.mxu1 %v3849_v20 }
  0x90   : > { %3617 = vmatprep.mubr.msk.f32.mxu0 %vm252_vm0, %v4217_v31  ;;  %1589 = vst.msk [vmem:[#allocation2 + $0x68] sm:$0x3] %vm1576_vm2, %v4063_v14  ;;  %1591 = vst.msk [vmem:[#allocation2 + $0x78] sm:$0x3] %vm1576_vm2, %v4063_v14  ;;  %v1605_v62 = vld [vmem:[#allocation2] sm:$0xff] }
  0x91   : > { %1592 = vst.msk [vmem:[#allocation2 + $0x80] sm:$0xff] %vm1574_vm1, %v4063_v14  ;;  %1594 = vst.msk [vmem:[#allocation2 + $0x90] sm:$0xff] %vm1574_vm1, %v4063_v14  ;;  %v1617_v21 = vld [vmem:[#allocation2 + $0x1] sm:$0xff] }
  0x92   : > { %1593 = vst.msk [vmem:[#allocation2 + $0x88] sm:$0x3] %vm1576_vm2, %v4063_v14  ;;  %1595 = vst.msk [vmem:[#allocation2 + $0x98] sm:$0x3] %vm1576_vm2, %v4063_v14  ;;  %3852 = vmatpush3.bf16.msra.mxu1 %v3849_v20  ;;  %3637 = vmatprep.mubr.msk.f32.mxu1 %vm1574_vm1, %v1617_v21  ;;  %v1888_v9 = vld [vmem:[#allocation2 + $0x2] sm:$0xff]  ;;  %v3873_v14 = vpack.c.bf16 %v3214_v13, %v3213_v12  ;;  %v3877_v21 = vpack.c.bf16 %v3224_v19, %v3223_v16 }
  0x93   : > { %3618 = vmatmul.mubr.msk.f32.vlgmr.msra.gmra.mrb[0].mxu0 %vm252_vm0, %v4220_v32  ;;  %3854 = vmatprep.subr.bf16.mxu1 %v3853_v24 }
  0x94   : > { %3620 = vmatprep.mubr.msk.f32.mxu0 %vm252_vm0, %v4227_v34 }
  0x97   : > { %3621 = vmatmul.mubr.msk.f32.gmra.mrb[2].mxu0 %vm252_vm0, %v4230_v35 }
  0x98   : > { %3623 = vmatprep.mubr.msk.f32.mxu0 %vm252_vm0, %v4237_v36 }
  0x9b   : > { %3624 = vmatmul.mubr.msk.f32.gmra.mrb[4].mxu0 %vm252_vm0, %v4240_v37 }
  0x9c   : > { %3626 = vmatprep.mubr.msk.f32.mxu0 %vm252_vm0, %v4247_v38 }
  0x9f   : > { %3627 = vmatmul.mubr.msk.f32.gmra.mrb[6].mxu0 %vm252_vm0, %v3167_v10 }
 0x166   : > { %v3619_v26 = vpop.f32.mrb[0].mxu0 }
 0x167   : > { %v1559_v27 = vadd.f32 %v3619_v26, %v3178_v25  ;;  %v1504_v28 = vpop.f32.mrb[1].mxu0 }
 0x168   : > { %v1558_v29 = vadd.f32 %v3178_v25, %v1504_v28  ;;  %v3226_v28 = vld [vmem:[%s4698_s3 + $0x98] sm:$0xff] }
 0x169   : > { %v1567_v30 = vmax.f32 %v1559_v27, 0.0  ;;  %v3225_v27 = vld [vmem:[%s4698_s3 + $0x90] sm:$0xff] }
 0x16a   : > { %v1566_v31 = vmax.f32 %v1558_v29, 0.0  ;;  %v3622_v32 = vpop.f32.mrb[2].mxu0  ;;  %v3881_v29 = vpack.c.bf16 %v3226_v28, %v3225_v27 }
 0x16b   : > { %1598 = vst.msk [vmem:[#allocation2 + $0x21] sm:$0xff] %vm1574_vm1, %v1567_v30  ;;  %v1561_v33 = vadd.f32 %v3622_v32, %v3178_v25  ;;  %v1514_v34 = vpop.f32.mrb[3].mxu0  ;;  %v3235_v30 = vld [vmem:[%s4698_s3 + $0xa0] sm:$0xff] }
 0x16c   : > { %1597 = vst.msk [vmem:[#allocation2 + $0x11] sm:$0xff] %vm1574_vm1, %v1566_v31  ;;  %v1560_v35 = vadd.f32 %v3178_v25, %v1514_v34  ;;  %v3236_v31 = vld [vmem:[%s4698_s3 + $0xa8] sm:$0xff]  ;;  %v3237_v34 = vld [vmem:[%s4698_s3 + $0xb0] sm:$0xff] }
 0x16d   : > { %v1569_v36 = vmax.f32 %v1561_v33, 0.0  ;;  %v3885_v32 = vpack.c.bf16 %v3236_v31, %v3235_v30 }
 0x16e   : > { %v1568_v37 = vmax.f32 %v1560_v35, 0.0  ;;  %v3625_v38 = vpop.f32.mrb[4].mxu0  ;;  %v3238_v35 = vld [vmem:[%s4698_s3 + $0xb8] sm:$0xff] }
 0x16f   : > { %1600 = vst.msk [vmem:[#allocation2 + $0x41] sm:$0xff] %vm1574_vm1, %v1569_v36  ;;  %v1563_v39 = vadd.f32 %v3625_v38, %v3178_v25  ;;  %v1524_v40 = vpop.f32.mrb[5].mxu0  ;;  %v3889_v36 = vpack.c.bf16 %v3238_v35, %v3237_v34  ;;  %v3248_v38 = vld [vmem:[%s4698_s3 + $0xc8] sm:$0xff] }
 0x170   : > { %1599 = vst.msk [vmem:[#allocation2 + $0x31] sm:$0xff] %vm1574_vm1, %v1568_v37  ;;  %v1562_v43 = vadd.f32 %v3178_v25, %v1524_v40  ;;  %v3247_v37 = vld [vmem:[%s4698_s3 + $0xc0] sm:$0xff] }
 0x171   : > { %v1571_v44 = vmax.f32 %v1563_v39, 0.0  ;;  %v3893_v39 = vpack.c.bf16 %v3248_v38, %v3247_v37 }
 0x172   : > { %v1570_v45 = vmax.f32 %v1562_v43, 0.0  ;;  %v3628_v46 = vpop.f32.mrb[6].mxu0  ;;  %v4435_v54 = vld [vmem:[#allocation2 + $0x21] sm:$0xff]  ;;  %v3897_v43 = vpack.c.bf16 %v3250_v42, %v3249_v41 }
 0x173   : > { %1602 = vst.msk [vmem:[#allocation2 + $0x61] sm:$0xff] %vm1574_vm1, %v1571_v44  ;;  %v1565_v48 = vadd.f32 %v3628_v46, %v3178_v25  ;;  %v1534_v49 = vpop.f32.mrb[7].mxu0  ;;  %v4424_v50 = vld [vmem:[#allocation2 + $0x11] sm:$0xff]  ;;  %v4475_v6 = vld [vmem:[#allocation2 + $0x20] sm:$0xff] }
 0x174   : > { %1601 = vst.msk [vmem:[#allocation2 + $0x51] sm:$0xff] %vm1574_vm1, %v1570_v45  ;;  %v1564_v53 = vadd.f32 %v3178_v25, %v1534_v49  ;;  %3638 = vmatmul.mubr.msk.f32.vlgmr.msra.gmra.mrb[0].mxu1 %vm1574_vm1, %v4424_v50  ;;  %v1606_v3 = vld [vmem:[#allocation2 + $0x10] sm:$0xff]  ;;  %v4513_v20 = vld [vmem:[#allocation2 + $0x22] sm:$0xff]  ;;  %v3262_v49 = vld [vmem:[%s4698_s3 + $0xf8] sm:$0xff] }
 0x175   : > { %v1573_v55 = vmax.f32 %v1565_v48, 0.0  ;;  %3856 = vmatpush3.bf16.msra.mxu1 %v3853_v24  ;;  %3640 = vmatprep.mubr.msk.f32.mxu1 %vm1574_vm1, %v4435_v54  ;;  %v1889_v15 = vld [vmem:[#allocation2 + $0x12] sm:$0xff]  ;;  %v3259_v44 = vld [vmem:[%s4698_s3 + $0xe0] sm:$0xff]  ;;  %v3260_v45 = vld [vmem:[%s4698_s3 + $0xe8] sm:$0xff] }
 0x176   : > { %v1572_v56 = vmax.f32 %v1564_v53, 0.0  ;;  %3858 = vmatprep.subr.bf16.mxu1 %v3857_v47  ;;  %v4445_v59 = vld [vmem:[#allocation2 + $0x41] sm:$0xff]  ;;  %v3901_v46 = vpack.c.bf16 %v3260_v45, %v3259_v44  ;;  %v3261_v48 = vld [vmem:[%s4698_s3 + $0xf0] sm:$0xff]  ;;  %v3909_v53 = vpack.c.bf16 %v3272_v52, %v3271_v51 }
 0x177   : > { %1604 = vst.msk [vmem:[#allocation2 + $0x81] sm:$0xff] %vm1574_vm1, %v1573_v55  ;;  %v4440_v58 = vld [vmem:[#allocation2 + $0x31] sm:$0xff]  ;;  %v4483_v11 = vld [vmem:[#allocation2 + $0x40] sm:$0xff] }
 0x178   : > { %1603 = vst.msk [vmem:[#allocation2 + $0x71] sm:$0xff] %vm1574_vm1, %v1572_v56  ;;  %3641 = vmatmul.mubr.msk.f32.gmra.mrb[2].mxu1 %vm1574_vm1, %v4440_v58  ;;  %v4479_v8 = vld [vmem:[#allocation2 + $0x30] sm:$0xff]  ;;  %v4521_v23 = vld [vmem:[#allocation2 + $0x42] sm:$0xff] }
 0x179   : > { %3643 = vmatprep.mubr.msk.f32.mxu1 %vm1574_vm1, %v4445_v59  ;;  %3860 = vmatpush3.bf16.msra.mxu1 %v3857_v47  ;;  %v4517_v22 = vld [vmem:[#allocation2 + $0x32] sm:$0xff] }
 0x17a   : > { %3862 = vmatprep.subr.bf16.mxu1 %v3861_v57  ;;  %v4453_v61 = vld [vmem:[#allocation2 + $0x61] sm:$0xff]  ;;  %v2496_v55 = vld [vmem:[#allocation2 + $0x90] sm:$0xff] }
 0x17b   : > { %v4449_v60 = vld [vmem:[#allocation2 + $0x51] sm:$0xff]  ;;  %v4491_v18 = vld [vmem:[#allocation2 + $0x60] sm:$0xff] }
 0x17c   : > { %3644 = vmatmul.mubr.msk.f32.gmra.mrb[4].mxu1 %vm1574_vm1, %v4449_v60  ;;  %v4487_v17 = vld [vmem:[#allocation2 + $0x50] sm:$0xff]  ;;  %v4529_v25 = vld [vmem:[#allocation2 + $0x62] sm:$0xff] }
 0x17d   : > { %3646 = vmatprep.mubr.msk.f32.mxu1 %vm1574_vm1, %v4453_v61  ;;  %v4525_v24 = vld [vmem:[#allocation2 + $0x52] sm:$0xff] }
 0x17e   : > { %v2045_v33 = vld [vmem:[#allocation2 + $0x80] sm:$0xff]  ;;  %v3273_v56 = vld [vmem:[%s4698_s3 + $0x110] sm:$0xff] }
 0x17f   : > { %v4457_v63 = vld [vmem:[#allocation2 + $0x71] sm:$0xff]  ;;  %v2195_v40 = vld [vmem:[#allocation2 + $0x81] sm:$0xff] }
 0x180   : > { %3647 = vmatmul.mubr.msk.f32.gmra.mrb[6].mxu1 %vm1574_vm1, %v4457_v63  ;;  %v4495_v10 = vld [vmem:[#allocation2 + $0x70] sm:$0xff]  ;;  %v2345_v47 = vld [vmem:[#allocation2 + $0x82] sm:$0xff] }
 0x181   : > { %3657 = vmatprep.mubr.msk.f32.mxu1 %vm1574_vm1, %v1605_v62  ;;  %v4533_v26 = vld [vmem:[#allocation2 + $0x72] sm:$0xff] }
 0x184   : > { %3658 = vmatmul.mubr.msk.f32.vlgmr.msra.gmra.mrb[0].mxu1 %vm1574_vm1, %v1606_v3 }
 0x185   : > { %3864 = vmatpush3.bf16.msra.mxu1 %v3861_v57  ;;  %3660 = vmatprep.mubr.msk.f32.mxu1 %vm1574_vm1, %v4475_v6  ;;  %v3274_v57 = vld [vmem:[%s4698_s3 + $0x118] sm:$0xff] }
 0x186   : > { %3866 = vmatprep.subr.bf16.mxu1 %v3865_v2  ;;  %v3913_v62 = vpack.c.bf16 %v3274_v57, %v3273_v56 }
 0x188   : > { %3661 = vmatmul.mubr.msk.f32.gmra.mrb[2].mxu1 %vm1574_vm1, %v4479_v8 }
 0x189   : > { %3663 = vmatprep.mubr.msk.f32.mxu1 %vm1574_vm1, %v4483_v11  ;;  %3868 = vmatpush3.bf16.msra.mxu1 %v3865_v2 }
 0x18a   : > { %3870 = vmatprep.subr.bf16.mxu1 %v3869_v7 }
 0x18c   : > { %3664 = vmatmul.mubr.msk.f32.gmra.mrb[4].mxu1 %vm1574_vm1, %v4487_v17 }
 0x18d   : > { %3666 = vmatprep.mubr.msk.f32.mxu1 %vm1574_vm1, %v4491_v18 }
 0x190   : > { %3667 = vmatmul.mubr.msk.f32.gmra.mrb[6].mxu1 %vm1574_vm1, %v4495_v10 }
 0x191   : > { %3677 = vmatprep.mubr.msk.f32.mxu1 %vm1574_vm1, %v1888_v9 }
 0x194   : > { %3678 = vmatmul.mubr.msk.f32.vlgmr.msra.gmra.mrb[0].mxu1 %vm1574_vm1, %v1889_v15 }
 0x195   : > { %3872 = vmatpush3.bf16.msra.mxu1 %v3869_v7  ;;  %3680 = vmatprep.mubr.msk.f32.mxu1 %vm1574_vm1, %v4513_v20 }
 0x196   : > { %3874 = vmatprep.subr.bf16.mxu1 %v3873_v14 }
 0x198   : > { %3681 = vmatmul.mubr.msk.f32.gmra.mrb[2].mxu1 %vm1574_vm1, %v4517_v22 }
 0x199   : > { %3683 = vmatprep.mubr.msk.f32.mxu1 %vm1574_vm1, %v4521_v23  ;;  %3876 = vmatpush3.bf16.msra.mxu1 %v3873_v14 }
 0x19a   : > { %3878 = vmatprep.subr.bf16.mxu1 %v3877_v21 }
 0x19c   : > { %3684 = vmatmul.mubr.msk.f32.gmra.mrb[4].mxu1 %vm1574_vm1, %v4525_v24 }
 0x19d   : > { %3686 = vmatprep.mubr.msk.f32.mxu1 %vm1574_vm1, %v4529_v25 }
 0x1a0   : > { %3687 = vmatmul.mubr.msk.f32.gmra.mrb[6].mxu1 %vm1574_vm1, %v4533_v26 }
 0x1a1   : > { %3697 = vmatprep.mubr.msk.f32.mxu1 %vm1574_vm1, %v1606_v3 }
 0x1a4   : > { %3698 = vmatmul.mubr.msk.f32.vlgmr.msra.gmra.mrb[0].mxu1 %vm1574_vm1, %v4475_v6 }
 0x1a5   : > { %3880 = vmatpush3.bf16.msra.mxu1 %v3877_v21  ;;  %3700 = vmatprep.mubr.msk.f32.mxu1 %vm1574_vm1, %v4479_v8 }
 0x1a6   : > { %3882 = vmatprep.subr.bf16.mxu1 %v3881_v29 }
 0x1a8   : > { %3701 = vmatmul.mubr.msk.f32.gmra.mrb[2].mxu1 %vm1574_vm1, %v4483_v11 }
 0x1a9   : > { %3703 = vmatprep.mubr.msk.f32.mxu1 %vm1574_vm1, %v4487_v17  ;;  %3884 = vmatpush3.bf16.msra.mxu1 %v3881_v29 }
 0x1aa   : > { %3886 = vmatprep.subr.bf16.mxu1 %v3885_v32 }
 0x1ac   : > { %3704 = vmatmul.mubr.msk.f32.gmra.mrb[4].mxu1 %vm1574_vm1, %v4491_v18 }
 0x1ad   : > { %3706 = vmatprep.mubr.msk.f32.mxu1 %vm1574_vm1, %v4495_v10 }
 0x1b0   : > { %3707 = vmatmul.mubr.msk.f32.gmra.mrb[6].mxu1 %vm1574_vm1, %v2045_v33 }
 0x1b1   : > { %3717 = vmatprep.mubr.msk.f32.mxu1 %vm1574_vm1, %v4424_v50  ;;  %v3905_v50 = vpack.c.bf16 %v3262_v49, %v3261_v48 }
 0x1b4   : > { %3718 = vmatmul.mubr.msk.f32.vlgmr.msra.gmra.mrb[0].mxu1 %vm1574_vm1, %v4435_v54 }
 0x1b5   : > { %3888 = vmatpush3.bf16.msra.mxu1 %v3885_v32  ;;  %3720 = vmatprep.mubr.msk.f32.mxu1 %vm1574_vm1, %v4440_v58 }
 0x1b6   : > { %3890 = vmatprep.subr.bf16.mxu1 %v3889_v36 }
 0x1b8   : > { %3721 = vmatmul.mubr.msk.f32.gmra.mrb[2].mxu1 %vm1574_vm1, %v4445_v59 }
 0x1b9   : > { %3723 = vmatprep.mubr.msk.f32.mxu1 %vm1574_vm1, %v4449_v60  ;;  %3892 = vmatpush3.bf16.msra.mxu1 %v3889_v36 }
 0x1ba   : > { %3894 = vmatprep.subr.bf16.mxu1 %v3893_v39 }
 0x1bc   : > { %3724 = vmatmul.mubr.msk.f32.gmra.mrb[4].mxu1 %vm1574_vm1, %v4453_v61 }
 0x1bd   : > { %3726 = vmatprep.mubr.msk.f32.mxu1 %vm1574_vm1, %v4457_v63 }
 0x1c0   : > { %3727 = vmatmul.mubr.msk.f32.gmra.mrb[6].mxu1 %vm1574_vm1, %v2195_v40 }
 0x1c1   : > { %3737 = vmatprep.mubr.msk.f32.mxu1 %vm1574_vm1, %v1889_v15 }
 0x1c4   : > { %3738 = vmatmul.mubr.msk.f32.vlgmr.msra.gmra.mrb[0].mxu1 %vm1574_vm1, %v4513_v20 }
 0x1c5   : > { %3896 = vmatpush3.bf16.msra.mxu1 %v3893_v39  ;;  %3740 = vmatprep.mubr.msk.f32.mxu1 %vm1574_vm1, %v4517_v22 }
 0x1c6   : > { %3898 = vmatprep.subr.bf16.mxu1 %v3897_v43 }
 0x1c8   : > { %3741 = vmatmul.mubr.msk.f32.gmra.mrb[2].mxu1 %vm1574_vm1, %v4521_v23 }
 0x1c9   : > { %3743 = vmatprep.mubr.msk.f32.mxu1 %vm1574_vm1, %v4525_v24  ;;  %3900 = vmatpush3.bf16.msra.mxu1 %v3897_v43 }
 0x1ca   : > { %3902 = vmatprep.subr.bf16.mxu1 %v3901_v46 }
 0x1cc   : > { %3744 = vmatmul.mubr.msk.f32.gmra.mrb[4].mxu1 %vm1574_vm1, %v4529_v25 }
 0x1cd   : > { %3746 = vmatprep.mubr.msk.f32.mxu1 %vm1574_vm1, %v4533_v26 }
 0x1d0   : > { %3747 = vmatmul.mubr.msk.f32.gmra.mrb[6].mxu1 %vm1574_vm1, %v2345_v47 }
 0x1d1   : > { %3757 = vmatprep.mubr.msk.f32.mxu1 %vm1574_vm1, %v4475_v6 }
 0x1d4   : > { %3758 = vmatmul.mubr.msk.f32.vlgmr.msra.gmra.mrb[0].mxu1 %vm1574_vm1, %v4479_v8 }
 0x1d5   : > { %3904 = vmatpush3.bf16.msra.mxu1 %v3901_v46  ;;  %3760 = vmatprep.mubr.msk.f32.mxu1 %vm1574_vm1, %v4483_v11 }
 0x1d6   : > { %3906 = vmatprep.subr.bf16.mxu1 %v3905_v50 }
 0x1d8   : > { %3761 = vmatmul.mubr.msk.f32.gmra.mrb[2].mxu1 %vm1574_vm1, %v4487_v17 }
 0x1d9   : > { %3763 = vmatprep.mubr.msk.f32.mxu1 %vm1574_vm1, %v4491_v18  ;;  %3908 = vmatpush3.bf16.msra.mxu1 %v3905_v50 }
 0x1da   : > { %3910 = vmatprep.subr.bf16.mxu1 %v3909_v53 }
 0x1dc   : > { %3764 = vmatmul.mubr.msk.f32.gmra.mrb[4].mxu1 %vm1574_vm1, %v4495_v10 }
 0x1dd   : > { %3766 = vmatprep.mubr.msk.f32.mxu1 %vm1574_vm1, %v2045_v33 }
 0x1e0   : > { %3767 = vmatmul.mubr.msk.f32.gmra.mrb[6].mxu1 %vm1574_vm1, %v2496_v55 }
 0x1e1   : > { %3777 = vmatprep.mubr.msk.f32.mxu1 %vm1574_vm1, %v4435_v54  ;;  %v2646_v54 = vld [vmem:[#allocation2 + $0x91] sm:$0xff] }
 0x1e4   : > { %3778 = vmatmul.mubr.msk.f32.vlgmr.msra.gmra.mrb[0].mxu1 %vm1574_vm1, %v4440_v58  ;;  %v2796_v58 = vld [vmem:[#allocation2 + $0x92] sm:$0xff] }
 0x1e5   : > { %3912 = vmatpush3.bf16.msra.mxu1 %v3909_v53  ;;  %3780 = vmatprep.mubr.msk.f32.mxu1 %vm1574_vm1, %v4445_v59  ;;  %v3283_v59 = vld [vmem:[%s4699_s4] ss:$0 sm:$0xff] }
 0x1e6   : > { %3914 = vmatprep.subr.bf16.mxu1 %v3913_v62 }
 0x1e8   : > { %3781 = vmatmul.mubr.msk.f32.gmra.mrb[2].mxu1 %vm1574_vm1, %v4449_v60 }
 0x1e9   : > { %3783 = vmatprep.mubr.msk.f32.mxu1 %vm1574_vm1, %v4453_v61  ;;  %3916 = vmatpush3.bf16.msra.mxu1 %v3913_v62 }
 0x1ec   : > { %3784 = vmatmul.mubr.msk.f32.gmra.mrb[4].mxu1 %vm1574_vm1, %v4457_v63 }
 0x1ed   : > { %3786 = vmatprep.mubr.msk.f32.mxu1 %vm1574_vm1, %v2195_v40 }
 0x1f0   : > { %3787 = vmatmul.mubr.msk.f32.gmra.mrb[6].mxu1 %vm1574_vm1, %v2646_v54 }
 0x1f1   : > { %3797 = vmatprep.mubr.msk.f32.mxu1 %vm1574_vm1, %v4513_v20 }
 0x1f4   : > { %3798 = vmatmul.mubr.msk.f32.vlgmr.msra.gmra.mrb[0].mxu1 %vm1574_vm1, %v4517_v22 }
 0x1f5   : > { %3800 = vmatprep.mubr.msk.f32.mxu1 %vm1574_vm1, %v4521_v23 }
 0x1f8   : > { %3801 = vmatmul.mubr.msk.f32.gmra.mrb[2].mxu1 %vm1574_vm1, %v4525_v24 }
 0x1f9   : > { %3803 = vmatprep.mubr.msk.f32.mxu1 %vm1574_vm1, %v4529_v25 }
 0x1fc   : > { %3804 = vmatmul.mubr.msk.f32.gmra.mrb[4].mxu1 %vm1574_vm1, %v4533_v26 }
 0x1fd   : > { %3806 = vmatprep.mubr.msk.f32.mxu1 %vm1574_vm1, %v2345_v47 }
 0x200   : > { %3807 = vmatmul.mubr.msk.f32.gmra.mrb[6].mxu1 %vm1574_vm1, %v2796_v58 }
 0x2c7   : > { %v3799_v60 = vpop.f32.mrb[0].mxu1 }
 0x2c8   : > { %v2947_v61 = vadd.f32 %v3799_v60, %v3283_v59  ;;  %v2892_v63 = vpop.f32.mrb[1].mxu1 }
 0x2c9   : > { %v2946_v0 = vadd.f32 %v3283_v59, %v2892_v63 }
 0x2ca   : > { %v2955_v1 = vmax.f32 %v2947_v61, 0.0 }
 0x2cb   : > { %v2954_v2 = vmax.f32 %v2946_v0, 0.0  ;;  %v3802_v3 = vpop.f32.mrb[2].mxu1 }
 0x2cc   : > { %2963 = vst.msk [vmem:[%s229_s25 + $0x8] sm:$0xff] %vm1574_vm1, %v2955_v1  ;;  %v2949_v4 = vadd.f32 %v3802_v3, %v3283_v59  ;;  %v2902_v5 = vpop.f32.mrb[3].mxu1 }
 0x2cd   : > { %2962 = vst.msk [vmem:[%s229_s25] sm:$0xff] %vm1574_vm1, %v2954_v2  ;;  %v2948_v6 = vadd.f32 %v3283_v59, %v2902_v5 }
 0x2ce   : > { %v2957_v7 = vmax.f32 %v2949_v4, 0.0 }
 0x2cf   : > { %v2956_v8 = vmax.f32 %v2948_v6, 0.0  ;;  %v3805_v11 = vpop.f32.mrb[4].mxu1 }
 0x2d0   : > { %2965 = vst.msk [vmem:[%s229_s25 + $0x18] sm:$0xff] %vm1574_vm1, %v2957_v7  ;;  %v2951_v17 = vadd.f32 %v3805_v11, %v3283_v59  ;;  %v2912_v18 = vpop.f32.mrb[5].mxu1 }
 0x2d1   : > { %2964 = vst.msk [vmem:[%s229_s25 + $0x10] sm:$0xff] %vm1574_vm1, %v2956_v8  ;;  %v2950_v9 = vadd.f32 %v3283_v59, %v2912_v18 }
 0x2d2   : > { %v2959_v10 = vmax.f32 %v2951_v17, 0.0 }
 0x2d3   : > { %v2958_v12 = vmax.f32 %v2950_v9, 0.0  ;;  %v3808_v13 = vpop.f32.mrb[6].mxu1 }
 0x2d4   : > { %2967 = vst.msk [vmem:[%s229_s25 + $0x28] sm:$0xff] %vm1574_vm1, %v2959_v10  ;;  %v2953_v14 = vadd.f32 %v3808_v13, %v3283_v59  ;;  %v2922_v15 = vpop.f32.mrb[7].mxu1 }
 0x2d5   : > { %2966 = vst.msk [vmem:[%s229_s25 + $0x20] sm:$0xff] %vm1574_vm1, %v2958_v12  ;;  %v2952_v16 = vadd.f32 %v3283_v59, %v2922_v15 }
 0x2d6   : > { %v2961_v19 = vmax.f32 %v2953_v14, 0.0 }
 0x2d7   : > { %v2960_v20 = vmax.f32 %v2952_v16, 0.0 }
 0x2d8   : > { %2969 = vst.msk [vmem:[%s229_s25 + $0x38] sm:$0xff] %vm1574_vm1, %v2961_v19 }
 0x2d9   : > { %2968 = vst.msk [vmem:[%s229_s25 + $0x30] sm:$0xff] %vm1574_vm1, %v2960_v20 }
 0x2da PF: > { %s15_s18 = sadd.s32 1, %s4061_s18  }
 0x2db   : > { %p12_p5 = scmp.ge.s32.totalorder %s15_s18, 4  }
 0x2dd   :  { %14 = sbr.rel (!%p12_p5) target bundleno = 1 (0x1), region = 93 }

</bundles_post_ra>
